<compile_context>
chip_gen: v7x
topology: tpu7x:2x2x1
jax: 0.10.0
libtpu: 0.0.40
codegen_flags: <defaults>
</compile_context>

<pallas_src>
import functools

import jax
import jax.numpy as jnp
from jax.experimental import pallas as pl
from jax.experimental.pallas import tpu as pltpu


def critic_kernel(state_ref, scale_ref, shift_ref, w1_ref, b1_ref, w2_ref,
                  b2_ref, out_ref):
    # State normalization in f32 on the activations (D=8 -> negligible VPU
    # work, hidden under MXU slack).  scale/shift are precomputed on the host.
    x_n = state_ref[...] * scale_ref[...] - shift_ref[...]          # [tb, D] f32
    x = x_n.astype(jnp.bfloat16)                                    # MXU operand

    # Layer 1: bf16 MXU matmul, f32 accumulate; bias + ReLU on the VPU (f32).
    h = jnp.dot(x, w1_ref[...], preferred_element_type=jnp.float32)
    h = jnp.maximum(h + b1_ref[...], 0.0)                           # [tb, H]

    # Layer 2 (512 -> 1): VPU multiply + XLU lane reduce against a lane-major
    # [1, H] weight row; avoids a second MXU push/pop with a padded [512, 1] tile.
    v = jnp.sum(h * w2_ref[...], axis=-1, keepdims=True) + b2_ref[0]
    out_ref[...] = v


def _round_up(x, m):
    return ((x + m - 1) // m) * m


@functools.partial(jax.jit, static_argnames=("tile_b",))
def critic_forward(state, scale, shift, w1_bf16, b1, w2_row, b2, *, tile_b=None):
    """state: [B, D] f32; scale/shift: [1, D] f32 (RunningMeanStd normalize);
       w1_bf16: [D, H] bf16; b1: [1, H] f32; w2_row: [1, H] f32; b2: [1] f32.
       Returns values of shape [B, 1] f32."""
    B, D = state.shape
    H = w1_bf16.shape[1]

    # Batch tile selection (perf review):
    #   * single grid step whenever the batch fits under the cap -> no per-step
    #     ~600-cycle pipeline overhead on single-TC v5e/v6e;
    #   * default cap 2048 rows: h tile (2048x512 f32 = 4 MiB) plus double-
    #     buffered state/out tiles and resident weights stays well inside the
    #     32 MiB scoped VMEM set below (and v7x's 64 MiB physical VMEM);
    #   * tb forced to a multiple of 8 (sublane alignment / (8,128) rule);
    #   * on v7x, pass tile_b = round_up(B/2, 8) so the "parallel" batch axis
    #     yields exactly 2 grid steps, one per TensorCore.
    cap = 2048 if tile_b is None else int(tile_b)
    tb = _round_up(max(8, min(cap, B)), 8)
    Bp = _round_up(B, tb)
    if Bp != B:
        state = jnp.pad(state, ((0, Bp - B), (0, 0)))

    out = pl.pallas_call(
        critic_kernel,
        out_shape=jax.ShapeDtypeStruct((Bp, 1), jnp.float32),
        grid=(Bp // tb,),
        in_specs=[
            pl.BlockSpec((tb, D), lambda i: (i, 0)),             # state: batch-tiled
            pl.BlockSpec((1, D), lambda i: (0, 0)),              # norm scale: resident
            pl.BlockSpec((1, D), lambda i: (0, 0)),              # norm shift: resident
            pl.BlockSpec((D, H), lambda i: (0, 0)),              # W1 (bf16): resident
            pl.BlockSpec((1, H), lambda i: (0, 0)),              # b1: resident
            pl.BlockSpec((1, H), lambda i: (0, 0)),              # w2 row: resident
            pl.BlockSpec(memory_space=pltpu.MemorySpace.SMEM),   # b2: SMEM scalar
        ],
        out_specs=pl.BlockSpec((tb, 1), lambda i: (i, 0)),
        compiler_params=pltpu.CompilerParams(
            dimension_semantics=("parallel",),     # shard batch across TCs on v7x
            vmem_limit_bytes=32 * 1024 * 1024,     # raise v5e's 16 MiB scoped default
        ),
    )(state, scale, shift, w1_bf16, b1, w2_row, b2)
    return out[:B]


def state_norm_params(rms_mean, rms_var, eps=1e-8):
    """Precompute f32 normalize() as x_n = x * scale - shift
       == (x - mean) / (sqrt(var) + eps)."""
    # TODO(synk): verify eps placement (sqrt(var)+eps vs sqrt(var+eps)) against
    # the repo's RunningMeanStd; this matches the common (std + 1e-8) variant.
    scale = 1.0 / (jnp.sqrt(rms_var) + eps)      # [1, D]
    shift = rms_mean * scale                     # [1, D]
    return scale, shift


def orthogonal(key, shape, gain):
    """Deterministic orthogonal init (matches torch.nn.init.orthogonal_ semantics)."""
    rows, cols = shape
    n = max(rows, cols)
    a = jax.random.normal(key, (n, min(rows, cols)), dtype=jnp.float32)
    q, r = jnp.linalg.qr(a)
    q = q * jnp.sign(jnp.diag(r))          # sign correction -> unique decomposition
    q = q[:rows, :cols] if rows >= cols else q[:cols, :rows].T
    return gain * q


if __name__ == "__main__":
    key = jax.random.PRNGKey(0)
    k_state, k_w1, k_w2 = jax.random.split(key, 3)

    # LunarLander-v2: state_dim = 8.  Small batch; with the default tile policy
    # the whole batch runs in a SINGLE grid step (no per-step pipeline overhead).
    B, D, H = 64, 8, 512

    state = jax.random.normal(k_state, (B, D), dtype=jnp.float32)

    # RunningMeanStd initial statistics: mean=0, var=1 (state_norm_enable path).
    # TODO(synk): RunningMeanStd.update (training-mode running statistics) is
    # host-side bookkeeping; only normalize() is implemented here.
    rms_mean = jnp.zeros((1, D), dtype=jnp.float32)
    rms_var = jnp.ones((1, D), dtype=jnp.float32)
    scale, shift = state_norm_params(rms_mean, rms_var)

    # _initialize_weights(): orthogonal(gain=sqrt(2)) for fc1_1,
    # orthogonal(0.01) for critic_linear, zero biases.
    relu_gain = 2.0 ** 0.5
    # torch Linear weight is [out, in]; store transposed [in, out] for x @ W.
    w1 = orthogonal(k_w1, (H, D), relu_gain).T            # [D, H] f32
    b1 = jnp.zeros((1, H), dtype=jnp.float32)
    w2_row = orthogonal(k_w2, (1, H), 0.01)               # [1, H] lane-major
    b2 = jnp.zeros((1,), dtype=jnp.float32)               # SMEM scalar

    w1_bf16 = w1.astype(jnp.bfloat16)                     # MXU operand dtype

    v = critic_forward(state, scale, shift, w1_bf16, b1, w2_row, b2)
    v = jax.block_until_ready(v)
    assert v.shape == (B, 1)

    # Reference 1: identical op order / dtypes as the kernel (tight tolerance).
    x_n = state * scale - shift
    h_bf = jnp.dot(x_n.astype(jnp.bfloat16), w1_bf16,
                   preferred_element_type=jnp.float32) + b1
    h_bf = jnp.maximum(h_bf, 0.0)
    v_ref_bf = jnp.sum(h_bf * w2_row, axis=-1, keepdims=True) + b2[0]
    assert jnp.allclose(v, v_ref_bf, atol=1e-4, rtol=1e-3), \
        float(jnp.max(jnp.abs(v - v_ref_bf)))

    # Reference 2: original unfolded f32 math (loose tolerance: bf16 MXU inputs).
    x_n32 = (state - rms_mean) / (jnp.sqrt(rms_var) + 1e-8)
    h_ref = jnp.maximum(x_n32 @ w1 + b1, 0.0)
    v_ref_f32 = h_ref @ w2_row.T + b2[0]
    assert jnp.allclose(v, v_ref_f32, atol=5e-3, rtol=5e-2), \
        float(jnp.max(jnp.abs(v - v_ref_f32)))

    print("KERNEL_OK")
</pallas_src>

<mosaic_0001>
module attributes {stable_mosaic.version = 11 : i64} {
  func.func @critic_kernel(%arg0: i32, %arg1: memref<64x8xf32, #tpu.memory_space<vmem>>, %arg2: memref<1x8xf32, #tpu.memory_space<vmem>>, %arg3: memref<1x8xf32, #tpu.memory_space<vmem>>, %arg4: memref<8x512xbf16, #tpu.memory_space<vmem>>, %arg5: memref<1x512xf32, #tpu.memory_space<vmem>>, %arg6: memref<1x512xf32, #tpu.memory_space<vmem>>, %arg7: memref<1xf32, #tpu.memory_space<smem>>, %arg8: memref<64x1xf32, #tpu.memory_space<vmem>>) attributes {dimension_semantics = [#tpu.dimension_semantics<parallel>], iteration_bounds = array<i64: 1>, scalar_prefetch = 0 : i64, scratch_operands = 0 : i64, tpu.core_type = #tpu.core_type<tc>, window_params = [{transform_indices = @transform_0, window_bounds = array<i64: 64, 8>}, {pipeline_mode = #tpu.pipeline_mode<synchronous>, transform_indices = @transform_1, window_bounds = array<i64: 1, 8>}, {pipeline_mode = #tpu.pipeline_mode<synchronous>, transform_indices = @transform_2, window_bounds = array<i64: 1, 8>}, {pipeline_mode = #tpu.pipeline_mode<synchronous>, transform_indices = @transform_3, window_bounds = array<i64: 8, 512>}, {pipeline_mode = #tpu.pipeline_mode<synchronous>, transform_indices = @transform_4, window_bounds = array<i64: 1, 512>}, {pipeline_mode = #tpu.pipeline_mode<synchronous>, transform_indices = @transform_5, window_bounds = array<i64: 1, 512>}, {transform_indices = @transform_6, window_bounds = array<i64: 1>}, {transform_indices = @transform_7, window_bounds = array<i64: 64, 1>}]} {
    %c0 = arith.constant 0 : index
    %c0_0 = arith.constant 0 : index
    %0 = vector.load %arg1[%c0, %c0_0] : memref<64x8xf32, #tpu.memory_space<vmem>>, vector<64x8xf32>
    %c0_1 = arith.constant 0 : index
    %c0_2 = arith.constant 0 : index
    %1 = vector.load %arg2[%c0_1, %c0_2] : memref<1x8xf32, #tpu.memory_space<vmem>>, vector<1x8xf32>
    %2 = vector.broadcast %1 : vector<1x8xf32> to vector<64x8xf32>
    %3 = arith.mulf %0, %2 : vector<64x8xf32>
    %c0_3 = arith.constant 0 : index
    %c0_4 = arith.constant 0 : index
    %4 = vector.load %arg3[%c0_3, %c0_4] : memref<1x8xf32, #tpu.memory_space<vmem>>, vector<1x8xf32>
    %5 = vector.broadcast %4 : vector<1x8xf32> to vector<64x8xf32>
    %6 = arith.subf %3, %5 : vector<64x8xf32>
    %7 = arith.truncf %6 : vector<64x8xf32> to vector<64x8xbf16>
    %c0_5 = arith.constant 0 : index
    %c0_6 = arith.constant 0 : index
    %8 = vector.load %arg4[%c0_5, %c0_6] : memref<8x512xbf16, #tpu.memory_space<vmem>>, vector<8x512xbf16>
    %cst = arith.constant dense<0.000000e+00> : vector<64x512xf32>
    %9 = tpu.matmul %7, %8, %cst {dimension_numbers = #tpu.dot_dimension_numbers<[1], [0], [0], [1], [0, 0, 1, 1], [], []>} : vector<64x8xbf16>, vector<8x512xbf16>, vector<64x512xf32> -> vector<64x512xf32>
    %c0_7 = arith.constant 0 : index
    %c0_8 = arith.constant 0 : index
    %10 = vector.load %arg5[%c0_7, %c0_8] : memref<1x512xf32, #tpu.memory_space<vmem>>, vector<1x512xf32>
    %11 = vector.broadcast %10 : vector<1x512xf32> to vector<64x512xf32>
    %12 = arith.addf %9, %11 : vector<64x512xf32>
    %cst_9 = arith.constant 0.000000e+00 : f32
    %13 = vector.broadcast %cst_9 : f32 to vector<64x512xf32>
    %14 = arith.maximumf %12, %13 : vector<64x512xf32>
    %c0_10 = arith.constant 0 : index
    %c0_11 = arith.constant 0 : index
    %15 = vector.load %arg6[%c0_10, %c0_11] : memref<1x512xf32, #tpu.memory_space<vmem>>, vector<1x512xf32>
    %16 = vector.broadcast %15 : vector<1x512xf32> to vector<64x512xf32>
    %17 = arith.mulf %14, %16 : vector<64x512xf32>
    %cst_12 = arith.constant dense<0.000000e+00> : vector<64xf32>
    %18 = vector.multi_reduction <add>, %17, %cst_12 [1] : vector<64x512xf32> to vector<64xf32>
    %19 = vector.shape_cast %18 : vector<64xf32> to vector<64x1xf32>
    %c0_13 = arith.constant 0 : index
    %20 = memref.load %arg7[%c0_13] : memref<1xf32, #tpu.memory_space<smem>>
    %21 = vector.broadcast %20 : f32 to vector<64x1xf32>
    %22 = arith.addf %19, %21 : vector<64x1xf32>
    %c0_14 = arith.constant 0 : index
    %c0_15 = arith.constant 0 : index
    %23 = vector.load %arg8[%c0_14, %c0_15] : memref<64x1xf32, #tpu.memory_space<vmem>>, vector<64x1xf32>
    tpu.vector_store %arg8[%c0_14, %c0_15], %22 {strides = array<i32>} : memref<64x1xf32, #tpu.memory_space<vmem>>, vector<64x1xf32>,
    return
  }
  func.func @transform_0(%arg0: i32) -> (i32, i32) {
    %c0_i32 = arith.constant 0 : i32
    %c0_i32_0 = arith.constant 0 : i32
    return %arg0, %c0_i32 : i32, i32
  }
  func.func @transform_1(%arg0: i32) -> (i32, i32) {
    %c0_i32 = arith.constant 0 : i32
    %c0_i32_0 = arith.constant 0 : i32
    %c0_i32_1 = arith.constant 0 : i32
    return %c0_i32, %c0_i32_0 : i32, i32
  }
  func.func @transform_2(%arg0: i32) -> (i32, i32) {
    %c0_i32 = arith.constant 0 : i32
    %c0_i32_0 = arith.constant 0 : i32
    %c0_i32_1 = arith.constant 0 : i32
    return %c0_i32, %c0_i32_0 : i32, i32
  }
  func.func @transform_3(%arg0: i32) -> (i32, i32) {
    %c0_i32 = arith.constant 0 : i32
    %c0_i32_0 = arith.constant 0 : i32
    %c0_i32_1 = arith.constant 0 : i32
    return %c0_i32, %c0_i32_0 : i32, i32
  }
  func.func @transform_4(%arg0: i32) -> (i32, i32) {
    %c0_i32 = arith.constant 0 : i32
    %c0_i32_0 = arith.constant 0 : i32
    %c0_i32_1 = arith.constant 0 : i32
    return %c0_i32, %c0_i32_0 : i32, i32
  }
  func.func @transform_5(%arg0: i32) -> (i32, i32) {
    %c0_i32 = arith.constant 0 : i32
    %c0_i32_0 = arith.constant 0 : i32
    %c0_i32_1 = arith.constant 0 : i32
    return %c0_i32, %c0_i32_0 : i32, i32
  }
  func.func @transform_6(%arg0: i32) -> i32 {
    %c0_i32 = arith.constant 0 : i32
    %c0_i32_0 = arith.constant 0 : i32
    return %c0_i32 : i32
  }
  func.func @transform_7(%arg0: i32) -> (i32, i32) {
    %c0_i32 = arith.constant 0 : i32
    %c0_i32_0 = arith.constant 0 : i32
    return %arg0, %c0_i32 : i32, i32
  }
}

</mosaic_0001>

<bundles_post_ra>
// kernel: critic_forward.1
= control target key start
LH: loop header
LB: loop body
LE: loop exit
PB: predicated region body
PF: predicated region fallthrough
CT: control target
= control target key end

     0   :  { %vm117_vm0 = vcmask 1043456   ;;  %v446_v2 = vmov 0   ;;  %vm104_vm1 = vcmask 64512   ;;  %v74_v39 = vlaneseq  ;;  %s656_s3 = inlined_call_operand.vmem [shape: bf16[8,512], index: 3, kind: input, shape index: {}]   ;;  %s657_s0 = inlined_call_operand.vmem [shape: f32[64,8], index: 0, kind: input, shape index: {}]   ;;  %s658_s1 = inlined_call_operand.vmem [shape: f32[1,8], index: 1, kind: input, shape index: {}]   ;;  %s659_s2 = inlined_call_operand.vmem [shape: f32[1,8], index: 2, kind: input, shape index: {}]   ;;  %s660_s4 = inlined_call_operand.vmem [shape: f32[1,512], index: 4, kind: input, shape index: {}]   ;;  %s661_s5 = inlined_call_operand.vmem [shape: f32[1,512], index: 5, kind: input, shape index: {}]   ;;  %s662_s6 = inlined_call_operand.<no memory space> [shape: f32[1], index: 6, kind: input, shape index: {}]   ;;  %s663_s7 = inlined_call_operand.vmem [shape: f32[64,1], index: 7, kind: output, shape index: {}]  }
   0x1   :  { %v70_v0 = vld [vmem:[%s656_s3] sm:$0xff]  ;;  %v71_v1 = vld [vmem:[%s656_s3 + $0x8] sm:$0xff]  ;;  %162 = vmatprep.mubr.bf16.mxu0 %v446_v2  ;;  %235 = vmatprep.mubr.bf16.mxu1 %v446_v2  ;;  %v30_v13 = vld [vmem:[%s657_s0 + $0x10] sm:$0xff]  ;;  %vm412_vm2 = vcmask 7168  }
   0x2   :  { %v28_v3 = vld [vmem:[%s657_s0] sm:$0xff]  ;;  %v428_v4 = vcombine.high %v70_v0, %v70_v0  ;;  %v430_v5 = vcombine.high %v71_v1, %v71_v1  ;;  %v427_v6 = vcombine.low %v70_v0, %v70_v0  ;;  %v429_v7 = vcombine.low %v71_v1, %v71_v1  ;;  %v29_v8 = vld [vmem:[%s657_s0 + $0x8] sm:$0xff]  ;;  %v31_v14 = vld [vmem:[%s657_s0 + $0x18] sm:$0xff] }
   0x3   :  { %v425_v9 = vld [vmem:[%s658_s1] ss:$0 sm:$0xff]  ;;  %v33_v25 = vld [vmem:[%s657_s0 + $0x28] sm:$0xff]  ;;  %v34_v31 = vld [vmem:[%s657_s0 + $0x30] sm:$0xff]  ;;  %v75_v40 = vshrl.u32 %v74_v39, 7 }
   0x4   :  { %v426_v10 = vld [vmem:[%s659_s2] ss:$0 sm:$0xff]  ;;  %v43_v11 = vmul.f32 %v425_v9, %v28_v3  ;;  %v44_v12 = vmul.f32 %v425_v9, %v29_v8  ;;  %431 = vmatprep.subr.msk.bf16.mxu0 %vm117_vm0, %v428_v4  ;;  %436 = vmatprep.subr.msk.bf16.mxu1 %vm117_vm0, %v430_v5  ;;  %v119_v15 = vsel %vm117_vm0, %v427_v6, 0  ;;  %v125_v16 = vsel %vm117_vm0, %v429_v7, 0  ;;  %v35_v32 = vld [vmem:[%s657_s0 + $0x38] sm:$0xff] }
   0x5   :  { %v45_v17 = vmul.f32 %v425_v9, %v30_v13  ;;  %131 = vmatpush1.bf16.msra.mxu0 %v119_v15  ;;  %204 = vmatpush1.bf16.msra.mxu1 %v125_v16  ;;  %v46_v20 = vmul.f32 %v425_v9, %v31_v14  ;;  %v32_v24 = vld [vmem:[%s657_s0 + $0x20] sm:$0xff]  ;;  %v48_v28 = vmul.f32 %v425_v9, %v33_v25  ;;  %v76_v41 = vsub.s32 0, %v75_v40 }
   0x6   :  { %v58_v18 = vsub.f32 %v43_v11, %v426_v10  ;;  %v59_v19 = vsub.f32 %v44_v12, %v426_v10  ;;  %v47_v27 = vmul.f32 %v425_v9, %v32_v24  ;;  %v49_v34 = vmul.f32 %v425_v9, %v34_v31  ;;  %v72_v43 = vld [vmem:[%s660_s4] sm:$0xf] }
   0x7   :  { %v60_v22 = vsub.f32 %v45_v17, %v426_v10  ;;  %v61_v23 = vsub.f32 %v46_v20, %v426_v10  ;;  %v63_v30 = vsub.f32 %v48_v28, %v426_v10  ;;  %v50_v35 = vmul.f32 %v425_v9, %v35_v32  ;;  %v308_v48 = vld [vmem:[%s661_s5] sm:$0xf] }
   0x8   :  { %v66_v21 = vpack.c.bf16 %v59_v19, %v58_v18  ;;  %v62_v29 = vsub.f32 %v47_v27, %v426_v10  ;;  %v64_v36 = vsub.f32 %v49_v34, %v426_v10  ;;  %v84_v42 = vsub.s32 2, %v75_v40 }
   0x9   :  { %v67_v26 = vpack.c.bf16 %v61_v23, %v60_v22  ;;  %v65_v37 = vsub.f32 %v50_v35, %v426_v10  ;;  %v80_v44 = vsub.s32 1, %v75_v40  ;;  %v88_v45 = vsub.s32 3, %v75_v40 }
   0xa   :  { %432 = vmatmul.mubr.msk.bf16.vlgmr.msra.gmra.mrb[0].mxu0 %vm104_vm1, %v66_v21  ;;  %437 = vmatmul.mubr.msk.bf16.vlgmr.msra.gmra.mrb[0].mxu1 %vm104_vm1, %v66_v21  ;;  %v68_v33 = vpack.c.bf16 %v63_v30, %v62_v29  ;;  %v538_v46 = vrot.slane %v72_v43, %v76_v41  ;;  %v540_v47 = vrot.slane %v72_v43, %v84_v42 }
   0xb   :  { %172 = vmatprep.mubr.bf16.mxu0 %v446_v2  ;;  %245 = vmatprep.mubr.bf16.mxu1 %v446_v2  ;;  %v69_v38 = vpack.c.bf16 %v65_v37, %v64_v36  ;;  %v545_v49 = vrot.slane %v72_v43, %v80_v44  ;;  %v547_v52 = vrot.slane %v72_v43, %v88_v45 }
   0xc   :  { %v550_v54 = vrot.slane %v308_v48, %v76_v41  ;;  %v553_v58 = vrot.slane %v308_v48, %v84_v42  ;;  %v556_v60 = vrot.slane %v308_v48, %v80_v44  ;;  %v567_v15 = vrot.slane %v308_v48, %v88_v45 }
  0x12   :  { %433 = vmatmul.mubr.msk.bf16.gmra.mrb[4].mxu0 %vm104_vm1, %v67_v26  ;;  %438 = vmatmul.mubr.msk.bf16.gmra.mrb[4].mxu1 %vm104_vm1, %v67_v26 }
  0x13   :  { %182 = vmatprep.mubr.bf16.mxu0 %v446_v2  ;;  %255 = vmatprep.mubr.bf16.mxu1 %v446_v2 }
  0x1a   :  { %434 = vmatmul.mubr.msk.bf16.gmra.mrb[8].mxu0 %vm104_vm1, %v68_v33  ;;  %439 = vmatmul.mubr.msk.bf16.gmra.mrb[8].mxu1 %vm104_vm1, %v68_v33 }
  0x1b   :  { %192 = vmatprep.mubr.bf16.mxu0 %v446_v2  ;;  %265 = vmatprep.mubr.bf16.mxu1 %v446_v2 }
  0x22   :  { %435 = vmatmul.mubr.msk.bf16.gmra.mrb[12].mxu0 %vm104_vm1, %v69_v38  ;;  %440 = vmatmul.mubr.msk.bf16.gmra.mrb[12].mxu1 %vm104_vm1, %v69_v38 }
  0xdd   :  { %v164_v50 = vpop.f32.mrb[0].mxu0  ;;  %v237_v51 = vpop.f32.mrb[0].mxu1 }
  0xde   :  { %v165_v53 = vadd.f32 %v164_v50, %v538_v46  ;;  %v238_v55 = vadd.f32 %v237_v51, %v540_v47  ;;  %v166_v56 = vpop.f32.mrb[1].mxu0  ;;  %v239_v57 = vpop.f32.mrb[1].mxu1 }
  0xdf   :  { %v167_v59 = vadd.f32 %v166_v56, %v545_v49  ;;  %v168_v61 = vpop.f32.mrb[2].mxu0  ;;  %v241_v62 = vpop.f32.mrb[2].mxu1  ;;  %v240_v5 = vadd.f32 %v239_v57, %v547_v52 }
  0xe0   :  { %v276_v63 = vmax.f32 %v165_v53, 0.0  ;;  %v278_v0 = vmax.f32 %v238_v55, 0.0  ;;  %v169_v1 = vadd.f32 %v168_v61, %v538_v46  ;;  %v170_v2 = vpop.f32.mrb[3].mxu0  ;;  %v243_v3 = vpop.f32.mrb[3].mxu1  ;;  %v242_v6 = vadd.f32 %v241_v62, %v540_v47 }
  0xe1   :  { %v277_v4 = vmax.f32 %v167_v59, 0.0  ;;  %v171_v7 = vadd.f32 %v170_v2, %v545_v49  ;;  %v244_v13 = vadd.f32 %v243_v3, %v547_v52  ;;  %v279_v16 = vmax.f32 %v240_v5, 0.0 }
  0xe2   :  { %v330_v8 = vmul.f32 %v550_v54, %v276_v63  ;;  %v280_v9 = vmax.f32 %v169_v1, 0.0  ;;  %v332_v10 = vmul.f32 %v553_v58, %v278_v0  ;;  %v282_v17 = vmax.f32 %v242_v6, 0.0 }
  0xe3   :  { %v331_v11 = vmul.f32 %v556_v60, %v277_v4  ;;  %v281_v12 = vmax.f32 %v171_v7, 0.0  ;;  %v283_v27 = vmax.f32 %v244_v13, 0.0  ;;  %v333_v41 = vmul.f32 %v567_v15, %v279_v16 }
  0xe4   :  { %v334_v14 = vmul.f32 %v550_v54, %v280_v9  ;;  %v336_v38 = vmul.f32 %v553_v58, %v282_v17 }
  0xe5   :  { %v335_v18 = vmul.f32 %v556_v60, %v281_v12  ;;  %v174_v19 = vpop.f32.mrb[4].mxu0  ;;  %v247_v20 = vpop.f32.mrb[4].mxu1  ;;  %v362_v21 = vadd.f32 %v331_v11, %v330_v8  ;;  %v337_v55 = vmul.f32 %v567_v15, %v283_v27 }
  0xe6   :  { %v175_v22 = vadd.f32 %v174_v19, %v538_v46  ;;  %v248_v23 = vadd.f32 %v247_v20, %v540_v47  ;;  %v176_v24 = vpop.f32.mrb[5].mxu0  ;;  %v249_v25 = vpop.f32.mrb[5].mxu1 }
  0xe7   :  { %v367_v26 = vadd.f32 %v335_v18, %v334_v14  ;;  %v177_v28 = vadd.f32 %v176_v24, %v545_v49  ;;  %v178_v29 = vpop.f32.mrb[6].mxu0  ;;  %v251_v30 = vpop.f32.mrb[6].mxu1  ;;  %v363_v31 = vadd.f32 %v362_v21, %v332_v10  ;;  %v250_v43 = vadd.f32 %v249_v25, %v547_v52 }
  0xe8   :  { %v284_v32 = vmax.f32 %v175_v22, 0.0  ;;  %v286_v33 = vmax.f32 %v248_v23, 0.0  ;;  %v179_v34 = vadd.f32 %v178_v29, %v538_v46  ;;  %v252_v35 = vadd.f32 %v251_v30, %v540_v47  ;;  %v180_v36 = vpop.f32.mrb[7].mxu0  ;;  %v253_v37 = vpop.f32.mrb[7].mxu1 }
  0xe9   :  { %v285_v39 = vmax.f32 %v177_v28, 0.0  ;;  %v181_v40 = vadd.f32 %v180_v36, %v545_v49  ;;  %v254_v45 = vadd.f32 %v253_v37, %v547_v52  ;;  %v364_v53 = vadd.f32 %v363_v31, %v333_v41 }
  0xea   :  { %v338_v42 = vmul.f32 %v550_v54, %v284_v32  ;;  %v288_v44 = vmax.f32 %v179_v34, 0.0  ;;  %v340_v48 = vmul.f32 %v553_v58, %v286_v33  ;;  %v290_v57 = vmax.f32 %v252_v35, 0.0 }
  0xeb   :  { %v339_v50 = vmul.f32 %v556_v60, %v285_v39  ;;  %v289_v51 = vmax.f32 %v181_v40, 0.0  ;;  %v368_v59 = vadd.f32 %v367_v26, %v336_v38  ;;  %365 = vadd.xlane.f32.xlu0 %v364_v53  ;;  %v287_v1 = vmax.f32 %v250_v43, 0.0 }
  0xec   :  { %v342_v56 = vmul.f32 %v550_v54, %v288_v44  ;;  %v291_v8 = vmax.f32 %v254_v45, 0.0  ;;  %v344_v13 = vmul.f32 %v553_v58, %v290_v57 }
  0xed   :  { %v343_v61 = vmul.f32 %v556_v60, %v289_v51  ;;  %v184_v62 = vpop.f32.mrb[8].mxu0  ;;  %v257_v63 = vpop.f32.mrb[8].mxu1  ;;  %v372_v0 = vadd.f32 %v339_v50, %v338_v42  ;;  %v369_v6 = vadd.f32 %v368_v59, %v337_v55  ;;  %v341_v27 = vmul.f32 %v567_v15, %v287_v1 }
  0xee   :  { %v185_v2 = vadd.f32 %v184_v62, %v538_v46  ;;  %v258_v3 = vadd.f32 %v257_v63, %v540_v47  ;;  %v186_v4 = vpop.f32.mrb[9].mxu0  ;;  %v259_v5 = vpop.f32.mrb[9].mxu1  ;;  %v345_v31 = vmul.f32 %v567_v15, %v291_v8 }
  0xef   :  { %v377_v7 = vadd.f32 %v343_v61, %v342_v56  ;;  %v187_v9 = vadd.f32 %v186_v4, %v545_v49  ;;  %v188_v10 = vpop.f32.mrb[10].mxu0  ;;  %v261_v11 = vpop.f32.mrb[10].mxu1  ;;  %v373_v12 = vadd.f32 %v372_v0, %v340_v48  ;;  %v260_v21 = vadd.f32 %v259_v5, %v547_v52  ;;  %370 = vadd.xlane.f32.xlu0 %v369_v6 }
  0xf0   :  { %v292_v14 = vmax.f32 %v185_v2, 0.0  ;;  %v294_v16 = vmax.f32 %v258_v3, 0.0  ;;  %v189_v17 = vadd.f32 %v188_v10, %v538_v46  ;;  %v190_v18 = vpop.f32.mrb[11].mxu0  ;;  %v263_v19 = vpop.f32.mrb[11].mxu1  ;;  %v262_v22 = vadd.f32 %v261_v11, %v540_v47 }
  0xf1   :  { %v293_v20 = vmax.f32 %v187_v9, 0.0  ;;  %v191_v23 = vadd.f32 %v190_v18, %v545_v49  ;;  %v264_v26 = vadd.f32 %v263_v19, %v547_v52  ;;  %v374_v33 = vadd.f32 %v373_v12, %v341_v27 }
  0xf2   :  { %v346_v24 = vmul.f32 %v550_v54, %v292_v14  ;;  %v296_v25 = vmax.f32 %v189_v17, 0.0  ;;  %v348_v28 = vmul.f32 %v553_v58, %v294_v16  ;;  %v378_v34 = vadd.f32 %v377_v7, %v344_v13 }
  0xf3   :  { %v347_v29 = vmul.f32 %v556_v60, %v293_v20  ;;  %v297_v30 = vmax.f32 %v191_v23, 0.0  ;;  %v295_v36 = vmax.f32 %v260_v21, 0.0  ;;  %v298_v37 = vmax.f32 %v262_v22, 0.0  ;;  %375 = vadd.xlane.f32.xlu1 %v374_v33 }
  0xf4   :  { %v350_v32 = vmul.f32 %v550_v54, %v296_v25  ;;  %v299_v41 = vmax.f32 %v264_v26, 0.0  ;;  %v379_v48 = vadd.f32 %v378_v34, %v345_v31 }
  0xf5   :  { %v382_v35 = vadd.f32 %v347_v29, %v346_v24  ;;  %v351_v38 = vmul.f32 %v556_v60, %v297_v30  ;;  %v194_v39 = vpop.f32.mrb[12].mxu0  ;;  %v267_v40 = vpop.f32.mrb[12].mxu1  ;;  %v349_v2 = vmul.f32 %v567_v15, %v295_v36  ;;  %v352_v6 = vmul.f32 %v553_v58, %v298_v37 }
  0xf6   :  { %v195_v42 = vadd.f32 %v194_v39, %v538_v46  ;;  %v268_v43 = vadd.f32 %v267_v40, %v540_v47  ;;  %v196_v44 = vpop.f32.mrb[13].mxu0  ;;  %v269_v45 = vpop.f32.mrb[13].mxu1  ;;  %v353_v12 = vmul.f32 %v567_v15, %v299_v41 }
  0xf7   :  { %v387_v50 = vadd.f32 %v351_v38, %v350_v32  ;;  %v197_v51 = vadd.f32 %v196_v44, %v545_v49  ;;  %v270_v53 = vadd.f32 %v269_v45, %v547_v52  ;;  %v198_v55 = vpop.f32.mrb[14].mxu0  ;;  %v271_v56 = vpop.f32.mrb[14].mxu1  ;;  %v383_v57 = vadd.f32 %v382_v35, %v348_v28  ;;  %380 = vadd.xlane.f32.xlu1 %v379_v48 }
  0xf8   :  { %v300_v59 = vmax.f32 %v195_v42, 0.0  ;;  %v302_v61 = vmax.f32 %v268_v43, 0.0  ;;  %v199_v62 = vadd.f32 %v198_v55, %v538_v46  ;;  %v272_v63 = vadd.f32 %v271_v56, %v540_v47  ;;  %v200_v0 = vpop.f32.mrb[15].mxu0  ;;  %v273_v1 = vpop.f32.mrb[15].mxu1 }
  0xf9   :  { %v301_v3 = vmax.f32 %v197_v51, 0.0  ;;  %v201_v4 = vadd.f32 %v200_v0, %v545_v49  ;;  %v274_v5 = vadd.f32 %v273_v1, %v547_v52  ;;  %v303_v8 = vmax.f32 %v270_v53, 0.0 }
  0xfa   :  { %v354_v7 = vmul.f32 %v550_v54, %v300_v59  ;;  %v304_v9 = vmax.f32 %v199_v62, 0.0  ;;  %v356_v46 = vmul.f32 %v553_v58, %v302_v61  ;;  %v306_v10 = vmax.f32 %v272_v63, 0.0 }
  0xfb   :  { %v355_v47 = vmul.f32 %v556_v60, %v301_v3  ;;  %v305_v11 = vmax.f32 %v201_v4, 0.0  ;;  %v384_v49 = vadd.f32 %v383_v57, %v349_v2  ;;  %v388_v14 = vadd.f32 %v387_v50, %v352_v6 }
  0xfc   :  { %v358_v13 = vmul.f32 %v550_v54, %v304_v9  ;;  %v307_v17 = vmax.f32 %v274_v5, 0.0  ;;  %v357_v19 = vmul.f32 %v567_v15, %v303_v8  ;;  %v360_v20 = vmul.f32 %v553_v58, %v306_v10 }
  0xfd   :  { %v392_v52 = vadd.f32 %v355_v47, %v354_v7  ;;  %v359_v16 = vmul.f32 %v556_v60, %v305_v11  ;;  %385 = vadd.xlane.f32.xlu0 %v384_v49  ;;  %v389_v18 = vadd.f32 %v388_v14, %v353_v12  ;;  %v403_v60 = vstv %s662_s6 }
  0xfe   :  { %v361_v23 = vmul.f32 %v567_v15, %v307_v17 }
  0xff   :  { %v397_v21 = vadd.f32 %v359_v16, %v358_v13  ;;  %v393_v22 = vadd.f32 %v392_v52, %v356_v46  ;;  %390 = vadd.xlane.f32.xlu1 %v389_v18 }
 0x101   :  { %v394_v24 = vadd.f32 %v393_v22, %v357_v19  ;;  %v398_v25 = vadd.f32 %v397_v21, %v360_v20 }
 0x103   :  { %395 = vadd.xlane.f32.xlu0 %v394_v24  ;;  %v399_v54 = vadd.f32 %v398_v25, %v361_v23 }
 0x105   :  { %400 = vadd.xlane.f32.xlu1 %v399_v54 }
 0x178   :  { %v366_v26 = vpop.xlane.xlu0 %365 }
 0x179   :  { %v404_v27 = vadd.f32 %v403_v60, %v366_v26 }
 0x17b   :  { %413 = vst.msk [vmem:[%s663_s7] sm:$0xff] %vm412_vm2, %v404_v27 }
 0x17c   :  { %v371_v58 = vpop.xlane.xlu0 %370 }
 0x17d   :  { %v405_v28 = vadd.f32 %v403_v60, %v371_v58 }
 0x17f   :  { %414 = vst.msk [vmem:[%s663_s7 + $0x8] sm:$0xff] %vm412_vm2, %v405_v28 }
 0x180   :  { %v376_v15 = vpop.xlane.xlu1 %375 }
 0x181   :  { %v406_v29 = vadd.f32 %v403_v60, %v376_v15 }
 0x183   :  { %415 = vst.msk [vmem:[%s663_s7 + $0x10] sm:$0xff] %vm412_vm2, %v406_v29 }
 0x184   :  { %v381_v30 = vpop.xlane.xlu1 %380 }
 0x185   :  { %v407_v31 = vadd.f32 %v403_v60, %v381_v30 }
 0x187   :  { %416 = vst.msk [vmem:[%s663_s7 + $0x18] sm:$0xff] %vm412_vm2, %v407_v31 }
 0x18a   :  { %v386_v32 = vpop.xlane.xlu0 %385 }
 0x18b   :  { %v408_v33 = vadd.f32 %v403_v60, %v386_v32 }
 0x18c   :  { %v391_v34 = vpop.xlane.xlu1 %390 }
 0x18d   :  { %417 = vst.msk [vmem:[%s663_s7 + $0x20] sm:$0xff] %vm412_vm2, %v408_v33  ;;  %v409_v35 = vadd.f32 %v403_v60, %v391_v34 }
 0x18f   :  { %418 = vst.msk [vmem:[%s663_s7 + $0x28] sm:$0xff] %vm412_vm2, %v409_v35 }
 0x190   :  { %v396_v36 = vpop.xlane.xlu0 %395 }
 0x191   :  { %v410_v37 = vadd.f32 %v403_v60, %v396_v36 }
 0x192   :  { %v401_v38 = vpop.xlane.xlu1 %400 }
 0x193   :  { %419 = vst.msk [vmem:[%s663_s7 + $0x30] sm:$0xff] %vm412_vm2, %v410_v37  ;;  %v411_v39 = vadd.f32 %v403_v60, %v401_v38 }
 0x195   :  { %420 = vst.msk [vmem:[%s663_s7 + $0x38] sm:$0xff] %vm412_vm2, %v411_v39 }

</bundles_post_ra>
